<compile_context>
chip_gen: v7x
topology: tpu7x:2x2x1
jax: 0.10.0
libtpu: 0.0.40
codegen_flags: <defaults>
</compile_context>

<pallas_src>
import functools

import jax
import jax.numpy as jnp
from jax.experimental import pallas as pl
from jax.experimental.pallas import tpu as pltpu

LANES = 128


def _round_up(x, m):
    return (x + m - 1) // m * m


def _pick_tiles(n, block_m, block_k):
    """Largest tiles <= requested that divide N; keep >=2 row tiles for v7x."""
    tm = min(block_m, n)
    while n % tm:
        tm //= 2
    tk = min(block_k, n)
    while n % tk:
        tk //= 2
    # v7x has 2 TensorCores: keep at least two blocks on the "parallel" axis.
    if tm == n and n % 2 == 0 and (n // 2) % 8 == 0:
        tm = n // 2
    return tm, tk


# -------- Pass 1:  S2 = relu(adj @ S1 + b1) @ W2  ---------------------------
def _layer1_kernel(adj_ref, s1_ref, b1_ref, w2_ref, s2_ref, acc_ref):
    k = pl.program_id(1)

    @pl.when(k == 0)
    def _():
        acc_ref[...] = jnp.zeros_like(acc_ref)

    # Single clean MXU op per step: acc += adj_tile @ s1_tile (bf16 -> f32).
    acc_ref[...] += jnp.dot(adj_ref[...], s1_ref[...],
                            preferred_element_type=jnp.float32)

    @pl.when(k == pl.num_programs(1) - 1)
    def _():
        h = jnp.maximum(acc_ref[...] + b1_ref[...], 0.0)
        # TODO(synk): F.dropout(training=True) would need pltpu.prng_random_bits;
        # the module is evaluated in inference mode, so dropout is the identity.
        s2 = jnp.dot(h.astype(jnp.bfloat16), w2_ref[...],
                     preferred_element_type=jnp.float32)
        s2_ref[...] = s2.astype(s2_ref.dtype)


# -------- Pass 2:  out = log_softmax(adj @ S2 + b2)  ------------------------
def _layer2_kernel(adj_ref, s2_ref, b2_ref, out_ref, acc_ref, *, num_class):
    k = pl.program_id(1)

    @pl.when(k == 0)
    def _():
        acc_ref[...] = jnp.zeros_like(acc_ref)

    acc_ref[...] += jnp.dot(adj_ref[...], s2_ref[...],
                            preferred_element_type=jnp.float32)

    @pl.when(k == pl.num_programs(1) - 1)
    def _():
        z = acc_ref[...] + b2_ref[...]
        # Mask padded class lanes so they don't perturb the log-softmax.
        lane = jax.lax.broadcasted_iota(jnp.int32, z.shape, 1)
        z = jnp.where(lane < num_class, z, -jnp.inf)
        m = jnp.max(z, axis=1, keepdims=True)
        shifted = z - m
        lse = jnp.log(jnp.sum(jnp.exp(shifted), axis=1, keepdims=True))
        out_ref[...] = shifted - lse


def gcn_forward(x, adj, w1, b1, w2, b2, *, block_m=512, block_k=1024):
    n, f = x.shape
    h = w1.shape[1]
    c = w2.shape[1]

    hp = _round_up(h, LANES)
    cp = _round_up(c, LANES)

    tm, tk = _pick_tiles(n, block_m, block_k)
    assert n % tm == 0 and n % tk == 0, "N must be divisible by the tile sizes"
    assert tk % LANES == 0 or tk == n
    assert tm % 8 == 0 or tm == n

    f32, bf16 = jnp.float32, jnp.bfloat16
    hi = jax.lax.Precision.HIGHEST

    # adj is the dominant HBM stream (read by both passes) -> bf16.
    adj_b = adj.astype(bf16)

    # Hoisted feature transform: S1 = x @ W1 once, fp32, rounded to bf16 and
    # zero-padded to Hp lanes for streaming into pass 1.
    s1_f32 = jnp.dot(x.astype(f32), w1.astype(f32), precision=hi)
    s1_p = jnp.zeros((n, hp), bf16).at[:, :h].set(s1_f32.astype(bf16))

    b1_p = jnp.zeros((1, hp), f32).at[:, :h].set(b1.reshape(1, -1).astype(f32))
    w2_p = jnp.zeros((hp, cp), bf16).at[:h, :c].set(w2.astype(bf16))
    b2_p = jnp.zeros((1, cp), f32).at[:, :c].set(b2.reshape(1, -1).astype(f32))

    grid = (n // tm, n // tk)
    cparams = pltpu.CompilerParams(
        dimension_semantics=("parallel", "arbitrary"),
        # Headroom for large adj tiles; fits every generation's scoped budget
        # (raises v5e's 16 MiB default, matches v6e/v7x defaults).
        vmem_limit_bytes=32 * 1024 * 1024,
    )

    # ---- pass 1: S2 = relu(adj @ S1 + b1) @ W2   -> (N, Cp) bf16 ----
    s2 = pl.pallas_call(
        _layer1_kernel,
        out_shape=jax.ShapeDtypeStruct((n, cp), bf16),
        grid_spec=pltpu.PrefetchScalarGridSpec(
            num_scalar_prefetch=0,
            grid=grid,
            in_specs=[
                pl.BlockSpec((tm, tk), lambda i, k: (i, k)),   # adj tile
                pl.BlockSpec((tk, hp), lambda i, k: (k, 0)),   # S1 rows
                pl.BlockSpec((1, hp), lambda i, k: (0, 0)),    # b1 (resident)
                pl.BlockSpec((hp, cp), lambda i, k: (0, 0)),   # W2 (resident)
            ],
            out_specs=pl.BlockSpec((tm, cp), lambda i, k: (i, 0)),
            scratch_shapes=[pltpu.VMEM((tm, hp), f32)],
        ),
        compiler_params=cparams,
    )(adj_b, s1_p, b1_p, w2_p)

    # ---- pass 2: out = log_softmax(adj @ S2 + b2) ----
    out_p = pl.pallas_call(
        functools.partial(_layer2_kernel, num_class=c),
        out_shape=jax.ShapeDtypeStruct((n, cp), f32),
        grid_spec=pltpu.PrefetchScalarGridSpec(
            num_scalar_prefetch=0,
            grid=grid,
            in_specs=[
                pl.BlockSpec((tm, tk), lambda i, k: (i, k)),   # adj tile
                pl.BlockSpec((tk, cp), lambda i, k: (k, 0)),   # S2 rows
                pl.BlockSpec((1, cp), lambda i, k: (0, 0)),    # b2 (resident)
            ],
            out_specs=pl.BlockSpec((tm, cp), lambda i, k: (i, 0)),
            scratch_shapes=[pltpu.VMEM((tm, cp), f32)],
        ),
        compiler_params=cparams,
    )(adj_b, s2, b2_p)

    return out_p[:, :c]


def gcn_reference(x, adj, w1, b1, w2, b2):
    """Pure-JAX reference mirroring the kernel's bf16 rounding points."""
    f32, bf16 = jnp.float32, jnp.bfloat16
    hi = jax.lax.Precision.HIGHEST
    cast = lambda a: a.astype(bf16).astype(f32)
    adj_b = cast(adj)
    s1 = cast(jnp.dot(x.astype(f32), w1.astype(f32), precision=hi))
    hidden = jnp.maximum(jnp.dot(adj_b, s1, precision=hi) + b1, 0.0)
    s2 = cast(jnp.dot(cast(hidden), cast(w2), precision=hi))
    z = jnp.dot(adj_b, s2, precision=hi) + b2
    return jax.nn.log_softmax(z, axis=1)


def init_gcn_layer_params(key, in_features, out_features):
    # GCN_layer reset_parameters: U(-stdv, stdv), stdv = 1/sqrt(out_features)
    stdv = 1.0 / (out_features ** 0.5)
    k_w, k_b = jax.random.split(key)
    w = jax.random.uniform(k_w, (in_features, out_features),
                           minval=-stdv, maxval=stdv, dtype=jnp.float32)
    b = jax.random.uniform(k_b, (1, out_features),
                           minval=-stdv, maxval=stdv, dtype=jnp.float32)
    return w, b


if __name__ == "__main__":
    # Small synthetic problem: N nodes, F input features, H hidden, C classes.
    N, F_IN, H, C = 256, 16, 32, 8
    dropout = 0.5  # unused at inference time

    key = jax.random.PRNGKey(0)
    k_x, k_adj, k_l1, k_l2 = jax.random.split(key, 4)

    x = jax.random.normal(k_x, (N, F_IN), dtype=jnp.float32)

    # Symmetric, row-normalized dense adjacency with self-loops.
    a_raw = (jax.random.uniform(k_adj, (N, N)) > 0.9).astype(jnp.float32)
    a_sym = jnp.maximum(a_raw, a_raw.T) + jnp.eye(N, dtype=jnp.float32)
    deg = jnp.sum(a_sym, axis=1, keepdims=True)
    adj = a_sym / deg

    w1, b1 = init_gcn_layer_params(k_l1, F_IN, H)
    w2, b2 = init_gcn_layer_params(k_l2, H, C)

    out = gcn_forward(x, adj, w1, b1, w2, b2)
    out = jax.block_until_ready(out)

    ref = gcn_reference(x, adj, w1, b1, w2, b2)

    assert out.shape == (N, C)
    assert jnp.allclose(out, ref, atol=1e-3, rtol=1e-3), "mismatch vs reference"

    print("KERNEL_OK")
</pallas_src>

<mosaic_0001>
module attributes {stable_mosaic.version = 11 : i64} {
  func.func @_layer1_kernel(%arg0: i32, %arg1: i32, %arg2: memref<128x256xbf16, #tpu.memory_space<vmem>>, %arg3: memref<256x128xbf16, #tpu.memory_space<vmem>>, %arg4: memref<1x128xf32, #tpu.memory_space<vmem>>, %arg5: memref<128x128xbf16, #tpu.memory_space<vmem>>, %arg6: memref<128x128xbf16, #tpu.memory_space<vmem>>, %arg7: memref<128x128xf32, #tpu.memory_space<vmem>>) attributes {dimension_semantics = [#tpu.dimension_semantics<parallel>, #tpu.dimension_semantics<arbitrary>], iteration_bounds = array<i64: 2, 1>, scalar_prefetch = 0 : i64, scratch_operands = 1 : i64, tpu.core_type = #tpu.core_type<tc>, window_params = [{transform_indices = @transform_0, window_bounds = array<i64: 128, 256>}, {transform_indices = @transform_1, window_bounds = array<i64: 256, 128>}, {pipeline_mode = #tpu.pipeline_mode<synchronous>, transform_indices = @transform_2, window_bounds = array<i64: 1, 128>}, {pipeline_mode = #tpu.pipeline_mode<synchronous>, transform_indices = @transform_3, window_bounds = array<i64: 128, 128>}, {transform_indices = @transform_4, window_bounds = array<i64: 128, 128>}]} {
    %c0_i32 = arith.constant 0 : i32
    %0 = arith.cmpi eq, %arg1, %c0_i32 : i32
    %1 = arith.extui %0 : i1 to i32
    %c0_i32_0 = arith.constant 0 : i32
    %2 = arith.cmpi ne, %1, %c0_i32_0 : i32
    scf.if %2 {
      %cst_10 = arith.constant 0.000000e+00 : f32
      %12 = vector.broadcast %cst_10 : f32 to vector<128x128xf32>
      %c0_11 = arith.constant 0 : index
      %c0_12 = arith.constant 0 : index
      %13 = vector.load %arg7[%c0_11, %c0_12] : memref<128x128xf32, #tpu.memory_space<vmem>>, vector<128x128xf32>
      tpu.vector_store %arg7[%c0_11, %c0_12], %12 {strides = array<i32>} : memref<128x128xf32, #tpu.memory_space<vmem>>, vector<128x128xf32>,
    } else {
    }
    %c0 = arith.constant 0 : index
    %c0_1 = arith.constant 0 : index
    %3 = vector.load %arg7[%c0, %c0_1] : memref<128x128xf32, #tpu.memory_space<vmem>>, vector<128x128xf32>
    %c0_2 = arith.constant 0 : index
    %c0_3 = arith.constant 0 : index
    %4 = vector.load %arg2[%c0_2, %c0_3] : memref<128x256xbf16, #tpu.memory_space<vmem>>, vector<128x256xbf16>
    %c0_4 = arith.constant 0 : index
    %c0_5 = arith.constant 0 : index
    %5 = vector.load %arg3[%c0_4, %c0_5] : memref<256x128xbf16, #tpu.memory_space<vmem>>, vector<256x128xbf16>
    %cst = arith.constant dense<0.000000e+00> : vector<128x128xf32>
    %6 = tpu.matmul %4, %5, %cst {dimension_numbers = #tpu.dot_dimension_numbers<[1], [0], [0], [1], [0, 0, 1, 1], [], []>} : vector<128x256xbf16>, vector<256x128xbf16>, vector<128x128xf32> -> vector<128x128xf32>
    %7 = arith.addf %3, %6 : vector<128x128xf32>
    %c0_6 = arith.constant 0 : index
    %c0_7 = arith.constant 0 : index
    %8 = vector.load %arg7[%c0_6, %c0_7] : memref<128x128xf32, #tpu.memory_space<vmem>>, vector<128x128xf32>
    tpu.vector_store %arg7[%c0_6, %c0_7], %7 {strides = array<i32>} : memref<128x128xf32, #tpu.memory_space<vmem>>, vector<128x128xf32>,
    %c0_i32_8 = arith.constant 0 : i32
    %9 = arith.cmpi eq, %arg1, %c0_i32_8 : i32
    %10 = arith.extui %9 : i1 to i32
    %c0_i32_9 = arith.constant 0 : i32
    %11 = arith.cmpi ne, %10, %c0_i32_9 : i32
    scf.if %11 {
      %c0_10 = arith.constant 0 : index
      %c0_11 = arith.constant 0 : index
      %12 = vector.load %arg7[%c0_10, %c0_11] : memref<128x128xf32, #tpu.memory_space<vmem>>, vector<128x128xf32>
      %c0_12 = arith.constant 0 : index
      %c0_13 = arith.constant 0 : index
      %13 = vector.load %arg4[%c0_12, %c0_13] : memref<1x128xf32, #tpu.memory_space<vmem>>, vector<1x128xf32>
      %14 = vector.broadcast %13 : vector<1x128xf32> to vector<128x128xf32>
      %15 = arith.addf %12, %14 : vector<128x128xf32>
      %cst_14 = arith.constant 0.000000e+00 : f32
      %16 = vector.broadcast %cst_14 : f32 to vector<128x128xf32>
      %17 = arith.maximumf %15, %16 : vector<128x128xf32>
      %18 = arith.truncf %17 : vector<128x128xf32> to vector<128x128xbf16>
      %c0_15 = arith.constant 0 : index
      %c0_16 = arith.constant 0 : index
      %19 = vector.load %arg5[%c0_15, %c0_16] : memref<128x128xbf16, #tpu.memory_space<vmem>>, vector<128x128xbf16>
      %cst_17 = arith.constant dense<0.000000e+00> : vector<128x128xf32>
      %20 = tpu.matmul %18, %19, %cst_17 {dimension_numbers = #tpu.dot_dimension_numbers<[1], [0], [0], [1], [0, 0, 1, 1], [], []>} : vector<128x128xbf16>, vector<128x128xbf16>, vector<128x128xf32> -> vector<128x128xf32>
      %21 = arith.truncf %20 : vector<128x128xf32> to vector<128x128xbf16>
      %c0_18 = arith.constant 0 : index
      %c0_19 = arith.constant 0 : index
      %22 = vector.load %arg6[%c0_18, %c0_19] : memref<128x128xbf16, #tpu.memory_space<vmem>>, vector<128x128xbf16>
      tpu.vector_store %arg6[%c0_18, %c0_19], %21 {strides = array<i32>} : memref<128x128xbf16, #tpu.memory_space<vmem>>, vector<128x128xbf16>,
    } else {
    }
    return
  }
  func.func @transform_0(%arg0: i32, %arg1: i32) -> (i32, i32) {
    %c0_i32 = arith.constant 0 : i32
    return %arg0, %arg1 : i32, i32
  }
  func.func @transform_1(%arg0: i32, %arg1: i32) -> (i32, i32) {
    %c0_i32 = arith.constant 0 : i32
    %c0_i32_0 = arith.constant 0 : i32
    return %arg1, %c0_i32 : i32, i32
  }
  func.func @transform_2(%arg0: i32, %arg1: i32) -> (i32, i32) {
    %c0_i32 = arith.constant 0 : i32
    %c0_i32_0 = arith.constant 0 : i32
    %c0_i32_1 = arith.constant 0 : i32
    return %c0_i32, %c0_i32_0 : i32, i32
  }
  func.func @transform_3(%arg0: i32, %arg1: i32) -> (i32, i32) {
    %c0_i32 = arith.constant 0 : i32
    %c0_i32_0 = arith.constant 0 : i32
    %c0_i32_1 = arith.constant 0 : i32
    return %c0_i32, %c0_i32_0 : i32, i32
  }
  func.func @transform_4(%arg0: i32, %arg1: i32) -> (i32, i32) {
    %c0_i32 = arith.constant 0 : i32
    %c0_i32_0 = arith.constant 0 : i32
    return %arg0, %c0_i32 : i32, i32
  }
}

</mosaic_0001>

<bundles_post_ra>
// kernel: tpu_custom_call.1
= control target key start
LH: loop header
LB: loop body
LE: loop exit
PB: predicated region body
PF: predicated region fallthrough
CT: control target
= control target key end

     0   :  { %9 = vsyncpa [#allocation4], 0  ;;  %s1986_s0 = inlined_call_operand.hbm [shape: bf16[256,256], index: 0, kind: input, shape index: {}]   ;;  %s1987_s1 = inlined_call_operand.hbm [shape: bf16[256,128], index: 1, kind: input, shape index: {}]   ;;  %s1988_s2 = inlined_call_operand.vmem [shape: f32[1,128], index: 2, kind: input, shape index: {}]   ;;  %s1989_s3 = inlined_call_operand.hbm [shape: bf16[128,128], index: 3, kind: input, shape index: {}]   ;;  %s1990_s4 = inlined_call_operand.hbm [shape: bf16[256,128], index: 4, kind: output, shape index: {}]  }
   0x1   :  { %11 = vsyncpa [#allocation4 + $0x1], 0 }
   0x2   :  { %12 = vsyncpa [#allocation7], 0 }
   0x3   :  { %13 = vsyncpa [#allocation5], 0 }
   0x4   :  { %15 = vsyncpa [#allocation5 + $0x1], 0  ;;  %s1691_s15 = smov 0   ;;  %s1693_s16 = smov 0  }
   0x5   :  { %s1695_s17 = smov 0   ;;  %s1697_s18 = smov 0  }
   0x6   :  { %s1699_s19 = smov 0   ;;  %s1701_s20 = smov 0  }
   0x7 LB: > { %s1090_s21 = sadd.s32 4294967295, %s1654_s20   ;;  %s1091_s22 = sadd.s32 4294967294, %s1654_s20   ;;  %s1654_s20 = sphi %s1701_s20, %s21_s20   ;;  %s1650_s19 = sphi %s1699_s19, %s2012_s19   ;;  %s1646_s18 = sphi %s1697_s18, %s2011_s18   ;;  %s1642_s17 = sphi %s1695_s17, %s2010_s17   ;;  %s1638_s16 = sphi %s1693_s16, %s2009_s16   ;;  %s1634_s15 = sphi %s1691_s15, %s2008_s15  }
   0x8   : > { %p55_p0 = scmp.ne.s32.totalorder %s1638_s16, %s1634_s15  ;;  %p1725_p1 = scmp.eq.s32.totalorder %s1090_s21, 0 }
   0x9   : > { %p1729_p2 = scmp.eq.s32.totalorder %s1090_s21, 1  ;;  %p153_p3 = scmp.eq.s32.totalorder %s1091_s22, 1 }
   0xa   : > { %s1995_s23 = scalar_select %p1725_p1, 1, 0 }
   0xb   : > { %p1735_p4 = por %p1725_p1, %p55_p0  ;;  %p1092_p5 = scmp.ge.s32.totalorder %s1654_s20, 1 }
   0xc   : > { %p1740_p6 = por %p153_p3, %p55_p0  ;;  %p160_p7 = scmp.lt.s32.totalorder %s1654_s20, 3 }
   0xd   : > { %s1997_s25 = scalar_select %p1735_p4, 1, 0 }
   0xe   : > { %s1998_s26 = scalar_select %p1740_p6, 1, 0 }
   0xf   : > { %p1745_p8 = pnand %p1092_p5, %p160_p7  ;;  %s1656_s28 = smov [#allocation6]  }
  0x10   : > { %s175_s29 = sshll.u32 %s1656_s28, 4  ;;  %s1657_s5 = smov [#allocation8]   ;;  %s1749_s29 = int_to_ptr.vmem [resolvable:$true] %s175_s29 }
  0x11   : > { %p1357_p9 = pneg %p1745_p8  ;;  %s191_s6 = sshll.u32 %s1657_s5, 4  ;;  %s1760_s6 = int_to_ptr.vmem [resolvable:$true] %s191_s6 }
  0x12   : > { %s1482_s9 = scalar_lea.hbm %s1987_s1, 2048 }
  0x13   : > { %p1756_p11 = pnand %p1357_p9, %p1725_p1  ;;  %p1483_p12 = scmp.ne.s32.totalorder %s1987_s1, %s1482_s9 }
  0x14   : > { %p1489_p5 = scmp.lt.u32.totalorder %s1482_s9, %s1987_s1 }
  0x15   : > { %p1484_p13 = pneg %p1756_p11 }
  0x17   : > { %p1485_p0 = pnand %p1484_p13, %p1483_p12 }
  0x19   : > { %p1486_p3 = pneg %p1485_p0 }
  0x1b   : > { %p1491_p7 = pnand %p1489_p5, %p1486_p3 }
  0x1d   : > { %1494 = shalt.err (!%p1491_p7)
}
  0x1e   : > { %s1495_s14 = scalar_lea.vmem %s1749_s29, 2048  ;;  %p1503_p1 = scmp.lt.s32.totalorder %s1749_s29, %s1749_s29 }
  0x1f   : > { %p1496_p9 = scmp.ne.s32.totalorder %s1749_s29, %s1495_s14  ;;  %p1504_p12 = scmp.lt.s32.totalorder %s1495_s14, %s1495_s14 }
  0x21   : > { %p1498_p10 = pnand %p1496_p9, %p1484_p13  ;;  %p1505_p0 = por %p1504_p12, %p1503_p1 }
  0x23   : > { %p1499_p6 = pneg %p1498_p10 }
  0x25   : > { %p1506_p4 = pnand %p1505_p0, %p1499_p6 }
  0x27   : > { %1509 = shalt.err (!%p1506_p4)
}
  0x28   : > { %s1658_s21 = smov 64   ;;  %s1659_s22 = smov 4  }
  0x29   : > { %1360 = dma.hbm_to_vmem [thread:$0]  (!%p1756_p11), %s1987_s1, 2048, %s1749_s29, [#allocation7], %s1658_s21, %s1658_s21, %s1659_s22  }
  0x2a   : > { %s1510_s9 = scalar_lea.hbm %s1989_s3, 1024 }
  0x2b   : > { %p1511_p1 = scmp.ne.s32.totalorder %s1989_s3, %s1510_s9  ;;  %p1517_p10 = scmp.lt.u32.totalorder %s1510_s9, %s1989_s3 }
  0x2d   : > { %p1513_p4 = pnand %p1511_p1, %p1484_p13 }
  0x2f   : > { %p1514_p6 = pneg %p1513_p4 }
  0x31   : > { %p1519_p3 = pnand %p1517_p10, %p1514_p6 }
  0x33   : > { %1522 = shalt.err (!%p1519_p3)
}
  0x34   : > { %s1523_s29 = scalar_lea.vmem %s1760_s6, 1024  ;;  %p1531_p12 = scmp.lt.s32.totalorder %s1760_s6, %s1760_s6 }
  0x35   : > { %p1524_p5 = scmp.ne.s32.totalorder %s1760_s6, %s1523_s29  ;;  %p1532_p0 = scmp.lt.s32.totalorder %s1523_s29, %s1523_s29 }
  0x37   : > { %p1526_p7 = pnand %p1524_p5, %p1484_p13  ;;  %p1533_p1 = por %p1532_p0, %p1531_p12 }
  0x39   : > { %p1527_p9 = pneg %p1526_p7 }
  0x3b   : > { %p1534_p4 = pnand %p1533_p1, %p1527_p9 }
  0x3d   : > { %1537 = shalt.err (!%p1534_p4)
}
  0x3e   : > { %1363 = dma.hbm_to_vmem [thread:$0]  (!%p1756_p11), %s1989_s3, 1024, %s1760_s6, [#allocation7], %s1658_s21, %s1658_s21, %s1659_s22  }
  0x3f   : > { %s33_s5 = sadd.s32 1, %s1650_s19  ;;  %s42_s7 = sadd.s32 1, %s1642_s17 }
  0x40   : > { %p35_p13 = scmp.ge.s32.totalorder %s33_s5, 2  ;;  %p49_p6 = scmp.ne.s32.totalorder %s1642_s17, %s1638_s16 }
  0x41   : > { %p50_p10 = scmp.eq.s32.totalorder %s1654_s20, 0  ;;  %p1374_p3 = scmp.lt.s32.totalorder %s1654_s20, 2 }
  0x42   : > { %s2014_s5 = smov (%p35_p13, %s33_s5), 0  ;;  %p1824_p7 = por %p1729_p2, %p49_p6 }
  0x43   : > { %p51_p5 = por %p50_p10, %p49_p6  ;;  %s37_s8 = ssub.s32 %s1650_s19, %s2014_s5 }
  0x44   : > { %s2001_s30 = scalar_select %p1824_p7, 1, 0 }
  0x45   : > { %s205_s9 = sand.u32 1, %s1642_s17   ;;  %p40_p9 = scmp.eq.s32.totalorder %s37_s8, 0 }
  0x46   : > { %s1096_s6 = sshll.u32 %s205_s9, 7  ;;  %s1168_s21 = sshll.u32 %s1650_s19, 11 }
  0x47   : > { %s1833_s22 = scalar_select %p40_p9, %s1642_s17, %s42_s7  }
  0x48   : > { %s1838_s12 = scalar_lea.hbm %s1986_s0, %s1168_s21  ;;  %s209_s24 = scalar_lea.vmem [#allocation3], %s1096_s6 }
  0x49   : > { %s219_s13 = sshll.u32 %s209_s24, 4  ;;  %p1842_p2 = pnand %p1374_p3, %p51_p5  ;;  %s1846_s13 = int_to_ptr.vmem [resolvable:$true] %s219_s13 }
  0x4a   : > { %s1848_s14 = scalar_lea.sflag [#allocation4], %s205_s9  ;;  %s1538_s28 = scalar_lea.hbm %s1838_s12, 2048 }
  0x4b   : > { %p1539_p11 = scmp.ne.s32.totalorder %s1838_s12, %s1538_s28  ;;  %p1540_p12 = pneg %p1842_p2 }
  0x4c   : > { %s1543_s6 = scalar_lea.hbm %s1986_s0, 4096  ;;  %p1544_p4 = scmp.lt.u32.totalorder %s1838_s12, %s1986_s0 }
  0x4d   : > { %p1541_p0 = pnand %p1540_p12, %p1539_p11  ;;  %p1545_p13 = scmp.lt.u32.totalorder %s1543_s6, %s1538_s28 }
  0x4e   : > { %p1547_p10 = scmp.lt.u32.totalorder %s1538_s28, %s1838_s12 }
  0x4f   : > { %p1542_p1 = pneg %p1541_p0  ;;  %p1546_p6 = por %p1545_p13, %p1544_p4 }
  0x51   : > { %p1548_p3 = por %p1547_p10, %p1546_p6 }
  0x53   : > { %p1549_p5 = pnand %p1548_p3, %p1542_p1 }
  0x55   : > { %1552 = shalt.err (!%p1549_p5)
}
  0x56   : > { %s1553_s9 = scalar_lea.vmem %s1846_s13, 2048  ;;  %s1660_s11 = smov [#allocation3]  }
  0x57   : > { %p1554_p9 = scmp.ne.s32.totalorder %s1846_s13, %s1553_s9  ;;  %s1558_s24 = sshll.u32 %s1660_s11, 4  ;;  %s1559_s24 = int_to_ptr.vmem [resolvable:$false] %s1558_s24 }
  0x58   : > { %s1560_s7 = scalar_lea.vmem %s1559_s24, 4096  ;;  %p1561_p7 = scmp.lt.s32.totalorder %s1846_s13, %s1559_s24 }
  0x59   : > { %p1556_p11 = pnand %p1554_p9, %p1540_p12  ;;  %p1562_p4 = scmp.lt.s32.totalorder %s1560_s7, %s1553_s9 }
  0x5b   : > { %p1557_p0 = pneg %p1556_p11  ;;  %p1563_p13 = por %p1562_p4, %p1561_p7 }
  0x5d   : > { %p1564_p6 = pnand %p1563_p13, %p1557_p0 }
  0x5f   : > { %1567 = shalt.err (!%p1564_p6)
}
  0x60   : > { %s1661_s28 = smov 128   ;;  %s1662_s8 = smov 8  }
  0x61   : > { %1367 = dma.hbm_to_vmem [thread:$0]  (!%p1842_p2), %s1838_s12, 2048, %s1846_s13, %s1848_s14, %s1661_s28, %s1661_s28, %s1662_s8  }
  0x62   : > { %231 = sbr.rel (%p1745_p8) target bundleno = 653 (0x28d), region = 36  ;;  %s1879_s6 = sand.u32 (!%p1745_p8), 1, %s1638_s16  }
  0x63   : > { %s1101_s21 = sshll.u32 (!%p1745_p8), %s1879_s6, 7  ;;  %s234_s10 = scalar_lea.sflag (!%p1745_p8), [#allocation4], %s1879_s6 }
  0x64   : > { %s1883_s9 = scalar_lea.vmem (!%p1745_p8), [#allocation3], %s1101_s21  ;;  %p2003_p7 = scmp.ne.s32.totalorder (!%p1745_p8), %s1997_s25, 0 }
  0x69   : > { %1621 = dma.done.wait (%p2003_p7), %s234_s10, 2048  }
  0x6a   : > { %1623 = vsyncadd (%p2003_p7), %s234_s10, 4294965248  ;;  %p2004_p2 = scmp.ne.s32.totalorder %s1995_s23, 0 }
  0x6c   : > { %1625 = dma.done.wait (%p2004_p2), [#allocation7], 3072  }
  0x6d   : > { %1627 = vsyncadd (%p2004_p2), [#allocation7], 4294964224  ;;  %v1434_v0 = vld [vmem:[#allocation6 + $0x40] sm:$0xff]   ;;  %v1436_v2 = vld [vmem:[#allocation6 + $0x48] sm:$0xff]   ;;  %s1104_s27 = sshll.u32 %s1879_s6, 6  ;;  %s1185_s29 = sshll.u32 %s1646_s18, 10 }
  0x6e   : > { %v1435_v1 = vld [vmem:[#allocation6] sm:$0xff]   ;;  %1233 = vmatprep.subr.bf16.mxu0 %v1434_v0  ;;  %v1437_v3 = vld [vmem:[#allocation6 + $0x8] sm:$0xff]   ;;  %v1438_v4 = vld [vmem:[#allocation6 + $0x50] sm:$0xff]   ;;  %s269_s12 = scalar_lea.vmem [#allocation9], %s1104_s27  ;;  %s1937_s24 = scalar_lea.hbm %s1990_s4, %s1185_s29 }
  0x6f   : > { %1234 = vmatpush3.bf16.msra.mxu0 %v1435_v1  ;;  %v1439_v5 = vld [vmem:[#allocation6 + $0x10] sm:$0xff]   ;;  %v1440_v6 = vld [vmem:[#allocation6 + $0x58] sm:$0xff]   ;;  %v1442_v8 = vld [vmem:[#allocation6 + $0x60] sm:$0xff]   ;;  %s985_s13 = sshll.u32 %s269_s12, 4  ;;  %s972_s7 = scalar_lea.sflag [#allocation5], %s1879_s6  ;;  %s1932_s13 = int_to_ptr.vmem [resolvable:$true] %s985_s13 }
  0x70   : > { %1235 = vmatprep.subr.bf16.mxu0 %v1436_v2  ;;  %v1441_v7 = vld [vmem:[#allocation6 + $0x18] sm:$0xff]   ;;  %v1443_v9 = vld [vmem:[#allocation6 + $0x20] sm:$0xff]   ;;  %v1444_v10 = vld [vmem:[#allocation6 + $0x68] sm:$0xff]   ;;  %s1568_s28 = scalar_lea.vmem %s1932_s13, 1024  ;;  %p2005_p12 = scmp.ne.s32.totalorder %s2001_s30, 0 }
  0x71   : > { %v1452_v11 = vld [vmem:[%s1883_s9 + $0x4] ss:$8 sps:$4 sm:$0xff]   ;;  %v1446_v13 = vld [vmem:[#allocation6 + $0x70] sm:$0xff]   ;;  %v1448_v15 = vld [vmem:[#allocation6 + $0x78] sm:$0xff]   ;;  %p1569_p8 = scmp.ne.s32.totalorder %s1932_s13, %s1568_s28  ;;  %s1663_s18 = smov [#allocation9]  }
  0x72   : > { %v1445_v12 = vld [vmem:[#allocation6 + $0x28] sm:$0xff]   ;;  %567 = vmatprep.mubr.bf16.mxu0 %v1452_v11  ;;  %v1447_v14 = vld [vmem:[#allocation6 + $0x30] sm:$0xff]   ;;  %v1449_v16 = vld [vmem:[#allocation6 + $0x38] sm:$0xff]   ;;  %s1572_s8 = sshll.u32 %s1663_s18, 4  ;;  %s1573_s8 = int_to_ptr.vmem [resolvable:$false] %s1572_s8 }
  0x73   : > { %1236 = vmatpush3.bf16.msra.mxu0 %v1437_v3  ;;  %v1474_v17 = vld [vmem:[#allocation8] sm:$0xff]   ;;  %v1475_v19 = vld [vmem:[#allocation8 + $0x8] sm:$0xff]   ;;  %v1453_v20 = vld [vmem:[%s1883_s9 + $0x14] ss:$8 sps:$4 sm:$0xff]   ;;  %p1570_p1 = pnand %p1569_p8, %p2005_p12  ;;  %s1574_s21 = scalar_lea.vmem %s1573_s8, 2048 }
  0x74   : > { %1237 = vmatprep.subr.bf16.mxu0 %v1438_v4  ;;  %v1450_v18 = vld [vmem:[%s1883_s9] ss:$8 sps:$4 sm:$0xff]   ;;  %1313 = vmatprep.subr.bf16.mxu1 %v1474_v17  ;;  %v1476_v21 = vld [vmem:[#allocation8 + $0x10] sm:$0xff]   ;;  %v1456_v23 = vld [vmem:[%s1883_s9 + $0x24] ss:$8 sps:$4 sm:$0xff]   ;;  %p1575_p3 = scmp.lt.s32.totalorder %s1932_s13, %s1573_s8  ;;  %p1576_p5 = scmp.lt.s32.totalorder %s1574_s21, %s1568_s28 }
  0x75   : > { %1314 = vmatpush3.bf16.msra.mxu1 %v1474_v17  ;;  %v1455_v22 = vld [vmem:[%s1883_s9 + $0x10] ss:$8 sps:$4 sm:$0xff]   ;;  %v1458_v24 = vld [vmem:[%s1883_s9 + $0x20] ss:$8 sps:$4 sm:$0xff]   ;;  %v1459_v25 = vld [vmem:[%s1883_s9 + $0x34] ss:$8 sps:$4 sm:$0xff]   ;;  %p1571_p10 = pneg %p1570_p1 }
  0x76   : > { %1315 = vmatprep.subr.bf16.mxu1 %v1475_v19  ;;  %v1461_v26 = vld [vmem:[%s1883_s9 + $0x30] ss:$8 sps:$4 sm:$0xff]   ;;  %v1462_v27 = vld [vmem:[%s1883_s9 + $0x44] ss:$8 sps:$4 sm:$0xff]   ;;  %v1464_v28 = vld [vmem:[%s1883_s9 + $0x40] ss:$8 sps:$4 sm:$0xff]   ;;  %p1577_p9 = por %p1576_p5, %p1575_p3 }
  0x77   : > { %1238 = vmatpush3.bf16.msra.mxu0 %v1439_v5  ;;  %v1465_v29 = vld [vmem:[%s1883_s9 + $0x54] ss:$8 sps:$4 sm:$0xff]   ;;  %v1467_v30 = vld [vmem:[%s1883_s9 + $0x50] ss:$8 sps:$4 sm:$0xff]   ;;  %v1468_v31 = vld [vmem:[%s1883_s9 + $0x64] ss:$8 sps:$4 sm:$0xff]  }
  0x78   : > { %1239 = vmatprep.subr.bf16.mxu0 %v1440_v6  ;;  %v1470_v32 = vld [vmem:[%s1883_s9 + $0x60] ss:$8 sps:$4 sm:$0xff]   ;;  %v1471_v33 = vld [vmem:[%s1883_s9 + $0x74] ss:$8 sps:$4 sm:$0xff]   ;;  %v1473_v34 = vld [vmem:[%s1883_s9 + $0x70] ss:$8 sps:$4 sm:$0xff]   ;;  %p1578_p11 = pnand %p1577_p9, %p1571_p10 }
  0x79   : > { %1316 = vmatpush3.bf16.msra.mxu1 %v1475_v19  ;;  %v1477_v35 = vld [vmem:[#allocation8 + $0x18] sm:$0xff]   ;;  %v1478_v36 = vld [vmem:[#allocation8 + $0x20] sm:$0xff]   ;;  %v1479_v37 = vld [vmem:[#allocation8 + $0x28] sm:$0xff]  }
  0x7a   : > { %1317 = vmatprep.subr.bf16.mxu1 %v1476_v21  ;;  %v1480_v38 = vld [vmem:[#allocation8 + $0x30] sm:$0xff]   ;;  %v1481_v39 = vld [vmem:[#allocation8 + $0x38] sm:$0xff]   ;;  %v1912_v42 = vld [vmem:[%s1988_s2] ss:$0 sm:$0xff] }
  0x7b   : > { %1240 = vmatpush3.bf16.msra.mxu0 %v1441_v7 }
  0x7c   : > { %1241 = vmatprep.subr.bf16.mxu0 %v1442_v8 }
  0x7d   : > { %1318 = vmatpush3.bf16.msra.mxu1 %v1476_v21 }
  0x7e   : > { %1319 = vmatprep.subr.bf16.mxu1 %v1477_v35 }
  0x7f   : > { %1242 = vmatpush3.bf16.msra.mxu0 %v1443_v9 }
  0x80   : > { %1243 = vmatprep.subr.bf16.mxu0 %v1444_v10 }
  0x81   : > { %1320 = vmatpush3.bf16.msra.mxu1 %v1477_v35 }
  0x82   : > { %1321 = vmatprep.subr.bf16.mxu1 %v1478_v36 }
  0x83   : > { %1244 = vmatpush3.bf16.msra.mxu0 %v1445_v12 }
  0x84   : > { %1245 = vmatprep.subr.bf16.mxu0 %v1446_v13 }
  0x85   : > { %1322 = vmatpush3.bf16.msra.mxu1 %v1478_v36 }
  0x86   : > { %1323 = vmatprep.subr.bf16.mxu1 %v1479_v37 }
  0x87   : > { %1246 = vmatpush3.bf16.msra.mxu0 %v1447_v14 }
  0x88   : > { %1247 = vmatprep.subr.bf16.mxu0 %v1448_v15 }
  0x89   : > { %1324 = vmatpush3.bf16.msra.mxu1 %v1479_v37 }
  0x8a   : > { %1325 = vmatprep.subr.bf16.mxu1 %v1480_v38 }
  0x8b   : > { %1248 = vmatpush3.bf16.msra.mxu0 %v1449_v16 }
  0x8d   : > { %1326 = vmatpush3.bf16.msra.mxu1 %v1480_v38 }
  0x8e   : > { %568 = vmatmul.mubr.bf16.vlgmr.msra.gmra.mrb[0].mxu0 %v1450_v18  ;;  %1327 = vmatprep.subr.bf16.mxu1 %v1481_v39 }
  0x8f   : > { %575 = vmatprep.mubr.bf16.mxu0 %v1453_v20 }
  0x91   : > { %1328 = vmatpush3.bf16.msra.mxu1 %v1481_v39 }
  0x96   : > { %576 = vmatmul.mubr.bf16.gmra.mrb[4].mxu0 %v1455_v22 }
  0x97   : > { %583 = vmatprep.mubr.bf16.mxu0 %v1456_v23 }
  0x9e   : > { %584 = vmatmul.mubr.bf16.gmra.mrb[8].mxu0 %v1458_v24 }
  0x9f   : > { %591 = vmatprep.mubr.bf16.mxu0 %v1459_v25 }
  0xa6   : > { %592 = vmatmul.mubr.bf16.gmra.mrb[12].mxu0 %v1461_v26 }
  0xa7   : > { %599 = vmatprep.mubr.bf16.mxu0 %v1462_v27 }
  0xae   : > { %600 = vmatmul.mubr.bf16.gmra.mrb[16].mxu0 %v1464_v28 }
  0xaf   : > { %607 = vmatprep.mubr.bf16.mxu0 %v1465_v29 }
  0xb6   : > { %608 = vmatmul.mubr.bf16.gmra.mrb[20].mxu0 %v1467_v30 }
  0xb7   : > { %615 = vmatprep.mubr.bf16.mxu0 %v1468_v31 }
  0xbe   : > { %616 = vmatmul.mubr.bf16.gmra.mrb[24].mxu0 %v1470_v32 }
  0xbf   : > { %623 = vmatprep.mubr.bf16.mxu0 %v1471_v33 }
  0xc6   : > { %624 = vmatmul.mubr.bf16.gmra.mrb[28].mxu0 %v1473_v34 }
 0x161   : > { %v1249_v40 = vpop.f32.mrb[0].mxu0 }
 0x162   : > { %v1250_v41 = vpop.f32.mrb[1].mxu0 }
 0x163   : > { %v1251_v43 = vadd.f32 %v1250_v41, %v1249_v40  ;;  %v1252_v44 = vpop.f32.mrb[2].mxu0 }
 0x164   : > { %v1253_v45 = vpop.f32.mrb[3].mxu0 }
 0x165   : > { %v1254_v46 = vadd.f32 %v1253_v45, %v1252_v44  ;;  %v690_v47 = vadd.f32 %v1251_v43, %v1912_v42 }
 0x167   : > { %v691_v48 = vadd.f32 %v1254_v46, %v1912_v42  ;;  %v706_v50 = vmax.f32 %v690_v47, 0.0 }
 0x169   : > { %v1255_v49 = vpop.f32.mrb[4].mxu0  ;;  %v707_v51 = vmax.f32 %v691_v48, 0.0 }
 0x16a   : > { %v1256_v52 = vpop.f32.mrb[5].mxu0 }
 0x16b   : > { %v1257_v53 = vadd.f32 %v1256_v52, %v1255_v49  ;;  %v1258_v54 = vpop.f32.mrb[6].mxu0  ;;  %v722_v55 = vpack.c.bf16 %v707_v51, %v706_v50 }
 0x16c   : > { %v1259_v56 = vpop.f32.mrb[7].mxu0 }
 0x16d   : > { %v692_v57 = vadd.f32 %v1257_v53, %v1912_v42  ;;  %v1260_v58 = vadd.f32 %v1259_v56, %v1258_v54  ;;  %1329 = vmatprep.mubr.bf16.mxu1 %v722_v55 }
 0x16f   : > { %v693_v59 = vadd.f32 %v1260_v58, %v1912_v42  ;;  %v708_v60 = vmax.f32 %v692_v57, 0.0 }
 0x171   : > { %v709_v61 = vmax.f32 %v693_v59, 0.0  ;;  %v1261_v62 = vpop.f32.mrb[8].mxu0 }
 0x172   : > { %v1262_v63 = vpop.f32.mrb[9].mxu0 }
 0x173   : > { %v1263_v0 = vadd.f32 %v1262_v63, %v1261_v62  ;;  %v1264_v1 = vpop.f32.mrb[10].mxu0  ;;  %v723_v2 = vpack.c.bf16 %v709_v61, %v708_v60 }
 0x174   : > { %v1265_v3 = vpop.f32.mrb[11].mxu0 }
 0x175   : > { %v694_v4 = vadd.f32 %v1263_v0, %v1912_v42  ;;  %v1266_v5 = vadd.f32 %v1265_v3, %v1264_v1  ;;  %1330 = vmatmul.mubr.bf16.vlgmr.msra.gmra.mrb[0].mxu1 %v723_v2 }
 0x177   : > { %v695_v6 = vadd.f32 %v1266_v5, %v1912_v42  ;;  %v710_v7 = vmax.f32 %v694_v4, 0.0 }
 0x179   : > { %v711_v8 = vmax.f32 %v695_v6, 0.0  ;;  %v1267_v9 = vpop.f32.mrb[12].mxu0 }
 0x17a   : > { %v1268_v10 = vpop.f32.mrb[13].mxu0 }
 0x17b   : > { %v1269_v11 = vadd.f32 %v1268_v10, %v1267_v9  ;;  %v1270_v12 = vpop.f32.mrb[14].mxu0  ;;  %v724_v13 = vpack.c.bf16 %v711_v8, %v710_v7 }
 0x17c   : > { %v1271_v14 = vpop.f32.mrb[15].mxu0 }
 0x17d   : > { %v696_v15 = vadd.f32 %v1269_v11, %v1912_v42  ;;  %v1272_v16 = vadd.f32 %v1271_v14, %v1270_v12  ;;  %1333 = vmatprep.mubr.bf16.mxu1 %v724_v13 }
 0x17f   : > { %v697_v17 = vadd.f32 %v1272_v16, %v1912_v42  ;;  %v712_v18 = vmax.f32 %v696_v15, 0.0 }
 0x181   : > { %v713_v19 = vmax.f32 %v697_v17, 0.0  ;;  %v1273_v20 = vpop.f32.mrb[16].mxu0 }
 0x182   : > { %v1274_v21 = vpop.f32.mrb[17].mxu0 }
 0x183   : > { %v1275_v22 = vadd.f32 %v1274_v21, %v1273_v20  ;;  %v1276_v23 = vpop.f32.mrb[18].mxu0  ;;  %v725_v24 = vpack.c.bf16 %v713_v19, %v712_v18 }
 0x184   : > { %v1277_v25 = vpop.f32.mrb[19].mxu0 }
 0x185   : > { %v698_v26 = vadd.f32 %v1275_v22, %v1912_v42  ;;  %v1278_v27 = vadd.f32 %v1277_v25, %v1276_v23  ;;  %1334 = vmatmul.mubr.bf16.gmra.mrb[4].mxu1 %v725_v24 }
 0x187   : > { %v699_v28 = vadd.f32 %v1278_v27, %v1912_v42  ;;  %v714_v29 = vmax.f32 %v698_v26, 0.0 }
 0x189   : > { %v715_v30 = vmax.f32 %v699_v28, 0.0  ;;  %v1279_v31 = vpop.f32.mrb[20].mxu0 }
 0x18a   : > { %v1280_v32 = vpop.f32.mrb[21].mxu0 }
 0x18b   : > { %v1281_v33 = vadd.f32 %v1280_v32, %v1279_v31  ;;  %v1282_v34 = vpop.f32.mrb[22].mxu0  ;;  %v726_v35 = vpack.c.bf16 %v715_v30, %v714_v29 }
 0x18c   : > { %v1283_v36 = vpop.f32.mrb[23].mxu0 }
 0x18d   : > { %v700_v37 = vadd.f32 %v1281_v33, %v1912_v42  ;;  %v1284_v38 = vadd.f32 %v1283_v36, %v1282_v34  ;;  %1337 = vmatprep.mubr.bf16.mxu1 %v726_v35 }
 0x18f   : > { %v701_v39 = vadd.f32 %v1284_v38, %v1912_v42  ;;  %v716_v40 = vmax.f32 %v700_v37, 0.0 }
 0x191   : > { %v717_v41 = vmax.f32 %v701_v39, 0.0  ;;  %v1285_v43 = vpop.f32.mrb[24].mxu0 }
 0x192   : > { %v1286_v44 = vpop.f32.mrb[25].mxu0 }
 0x193   : > { %v1287_v45 = vadd.f32 %v1286_v44, %v1285_v43  ;;  %v1288_v46 = vpop.f32.mrb[26].mxu0  ;;  %v727_v47 = vpack.c.bf16 %v717_v41, %v716_v40 }
 0x194   : > { %v1289_v48 = vpop.f32.mrb[27].mxu0 }
 0x195   : > { %v702_v49 = vadd.f32 %v1287_v45, %v1912_v42  ;;  %v1290_v50 = vadd.f32 %v1289_v48, %v1288_v46  ;;  %1338 = vmatmul.mubr.bf16.gmra.mrb[8].mxu1 %v727_v47 }
 0x197   : > { %v703_v51 = vadd.f32 %v1290_v50, %v1912_v42  ;;  %v718_v52 = vmax.f32 %v702_v49, 0.0 }
 0x199   : > { %v719_v53 = vmax.f32 %v703_v51, 0.0  ;;  %v1291_v54 = vpop.f32.mrb[28].mxu0 }
 0x19a   : > { %v1292_v55 = vpop.f32.mrb[29].mxu0 }
 0x19b   : > { %v1293_v56 = vadd.f32 %v1292_v55, %v1291_v54  ;;  %v1294_v57 = vpop.f32.mrb[30].mxu0  ;;  %v728_v58 = vpack.c.bf16 %v719_v53, %v718_v52 }
 0x19c   : > { %v1295_v59 = vpop.f32.mrb[31].mxu0 }
 0x19d   : > { %v704_v60 = vadd.f32 %v1293_v56, %v1912_v42  ;;  %v1296_v61 = vadd.f32 %v1295_v59, %v1294_v57  ;;  %1341 = vmatprep.mubr.bf16.mxu1 %v728_v58 }
 0x19f   : > { %v705_v62 = vadd.f32 %v1296_v61, %v1912_v42  ;;  %v720_v63 = vmax.f32 %v704_v60, 0.0 }
 0x1a1   : > { %v721_v0 = vmax.f32 %v705_v62, 0.0 }
 0x1a3   : > { %v729_v1 = vpack.c.bf16 %v721_v0, %v720_v63 }
 0x1a5   : > { %1342 = vmatmul.mubr.bf16.gmra.mrb[12].mxu1 %v729_v1 }
 0x248   : > { %v1331_v2 = vpop.f32.mrb[0].mxu1 }
 0x249   : > { %v828_v3 = vpop.f32.mrb[1].mxu1 }
 0x24a   : > { %v1332_v4 = vpop.f32.mrb[2].mxu1 }
 0x24b   : > { %v1194_v5 = vpack.c.bf16 %v1332_v4, %v1331_v2  ;;  %v831_v6 = vpop.f32.mrb[3].mxu1 }
 0x24c   : > { %v1189_v7 = vpack.c.bf16 %v831_v6, %v828_v3 }
 0x24d   : > { %1226 = vst [vmem:[%s269_s12 + $0x8] sm:$0xff] %v1194_v5  }
 0x24e   : > { %1190 = vst [vmem:[%s269_s12] sm:$0xff] %v1189_v7  }
 0x258   : > { %v1335_v8 = vpop.f32.mrb[4].mxu1 }
 0x259   : > { %v844_v9 = vpop.f32.mrb[5].mxu1 }
 0x25a   : > { %v1336_v10 = vpop.f32.mrb[6].mxu1 }
 0x25b   : > { %v1204_v11 = vpack.c.bf16 %v1336_v10, %v1335_v8  ;;  %v847_v42 = vpop.f32.mrb[7].mxu1 }
 0x25c   : > { %v1199_v12 = vpack.c.bf16 %v847_v42, %v844_v9 }
 0x25d   : > { %1228 = vst [vmem:[%s269_s12 + $0x18] sm:$0xff] %v1204_v11  }
 0x25e   : > { %1227 = vst [vmem:[%s269_s12 + $0x10] sm:$0xff] %v1199_v12  }
 0x268   : > { %v1339_v13 = vpop.f32.mrb[8].mxu1 }
 0x269   : > { %v860_v14 = vpop.f32.mrb[9].mxu1 }
 0x26a   : > { %v1340_v15 = vpop.f32.mrb[10].mxu1 }
 0x26b   : > { %v1214_v16 = vpack.c.bf16 %v1340_v15, %v1339_v13  ;;  %v863_v17 = vpop.f32.mrb[11].mxu1 }
 0x26c   : > { %v1209_v18 = vpack.c.bf16 %v863_v17, %v860_v14 }
 0x26d   : > { %1230 = vst [vmem:[%s269_s12 + $0x28] sm:$0xff] %v1214_v16  }
 0x26e   : > { %1229 = vst [vmem:[%s269_s12 + $0x20] sm:$0xff] %v1209_v18  }
 0x278   : > { %v1343_v19 = vpop.f32.mrb[12].mxu1 }
 0x279   : > { %v876_v20 = vpop.f32.mrb[13].mxu1 }
 0x27a   : > { %v1344_v21 = vpop.f32.mrb[14].mxu1 }
 0x27b   : > { %v1224_v22 = vpack.c.bf16 %v1344_v21, %v1343_v19  ;;  %v879_v23 = vpop.f32.mrb[15].mxu1 }
 0x27c   : > { %v1219_v24 = vpack.c.bf16 %v879_v23, %v876_v20 }
 0x27d   : > { %1232 = vst [vmem:[%s269_s12 + $0x38] sm:$0xff] %v1224_v22  }
 0x27e   : > { %1231 = vst [vmem:[%s269_s12 + $0x30] sm:$0xff] %v1219_v24  }
 0x27f   : > { %1581 = shalt.err (!%p1578_p11)
}
 0x280   : > { %s1582_s10 = scalar_lea.hbm %s1937_s24, 1024  ;;  %s1586_s25 = scalar_lea.hbm %s1990_s4, 2048 }
 0x281   : > { %p1583_p0 = scmp.ne.s32.totalorder %s1937_s24, %s1582_s10  ;;  %p1587_p6 = scmp.lt.u32.totalorder %s1937_s24, %s1990_s4 }
 0x282   : > { %p1588_p7 = scmp.lt.u32.totalorder %s1586_s25, %s1582_s10  ;;  %p1590_p8 = scmp.lt.u32.totalorder %s1582_s10, %s1937_s24 }
 0x283   : > { %p1584_p4 = pnand %p1583_p0, %p2005_p12 }
 0x284   : > { %p1589_p2 = por %p1588_p7, %p1587_p6 }
 0x285   : > { %p1585_p13 = pneg %p1584_p4 }
 0x286   : > { %p1591_p1 = por %p1590_p8, %p1589_p2 }
 0x288   : > { %p1592_p10 = pnand %p1591_p1, %p1585_p13 }
 0x28a   : > { %1595 = shalt.err (!%p1592_p10)
}
 0x28b   : > { %s1664_s29 = smov 64   ;;  %s1665_s14 = smov 4  }
 0x28c   : > { %1355 = dma.vmem_to_hbm [thread:$0]  (%p2005_p12), %s1932_s13, 1024, %s1937_s24, %s972_s7, %s1664_s29, %s1664_s29, %s1665_s14  }
 0x28d PF: > { %s1000_s11 = sand.u32 1, %s1634_s15   ;;  %p2006_p3 = scmp.ne.s32.totalorder %s1998_s26, 0 }
 0x28e   : > { %p2007_p5 = scmp.ge.s32.totalorder %s1654_s20, 2  ;;  %s1001_s28 = scalar_lea.sflag [#allocation5], %s1000_s11 }
 0x290   : > { %p1369_p9 = pnand %p2007_p5, %p2006_p3 }
 0x292   : > { %1629 = dma.done.wait (!%p1369_p9), %s1001_s28, 1024  }
 0x293   : > { %1631 = vsyncadd (!%p1369_p9), %s1001_s28, 4294966272  ;;  %s21_s20 = sadd.s32 1, %s1654_s20   ;;  %s2008_s15 = smov %s1638_s16 }
 0x294   : > { %p18_p11 = scmp.ge.s32.totalorder %s21_s20, 4   ;;  %s2009_s16 = smov %s1642_s17 }
 0x295   : > { %s2010_s17 = smov %s1833_s22  ;;  %s2011_s18 = smov %s1650_s19 }
 0x296   : > { %s2012_s19 = smov %s2014_s5  ;;  %20 = sbr.rel (!%p18_p11) target bundleno = 7 (0x7), region = 98 }
 0x29d   :  { %1006 = vsyncpa [#allocation4], 1 }
 0x29e   :  { %1008 = vsyncpa [#allocation4 + $0x1], 1 }
 0x29f   :  { %1009 = vsyncpa [#allocation7], 1 }
 0x2a0   :  { %1010 = vsyncpa [#allocation5], 1 }
 0x2a1   :  { %1012 = vsyncpa [#allocation5 + $0x1], 1 }

</bundles_post_ra>
